<compile_context>
chip_gen: v7x
topology: tpu7x:2x2x1
jax: 0.10.0
libtpu: 0.0.40
codegen_flags: <defaults>
</compile_context>

<pallas_src>
import jax
import jax.numpy as jnp
from jax.experimental import pallas as pl
from jax.experimental.pallas import tpu as pltpu

LANE = 128


def _round_up(x: int, m: int) -> int:
    return ((x + m - 1) // m) * m


def _pad2(x, rows: int, cols: int):
    return jnp.pad(x, ((0, rows - x.shape[0]), (0, cols - x.shape[1])))


def _make_mlp_policy_kernel(n_layers: int):
    """Kernel for n_layers x (Linear+Tanh) followed by a final Linear.

    Ref layout: obs_ref, (W_ref, b_ref) * (n_layers + 1), mean_out_ref.
    Weights arrive in bf16 (lane-padded); biases in f32; obs tile in f32.
    """

    def kernel(*refs):
        obs_ref = refs[0]
        mean_out_ref = refs[-1]
        h = obs_ref[...]  # (TILE_B, ob_pad) f32
        idx = 1
        for _ in range(n_layers):
            w_ref = refs[idx]
            b_ref = refs[idx + 1]
            idx += 2
            y = jnp.dot(
                h.astype(w_ref.dtype), w_ref[...],
                preferred_element_type=jnp.float32,
            )
            # bias-add + tanh stay in f32 (v5e VPU/EUP have no bf16).
            h = jnp.tanh(y + b_ref[...])
        w_out_ref = refs[idx]
        b_out_ref = refs[idx + 1]
        mean = jnp.dot(
            h.astype(w_out_ref.dtype), w_out_ref[...],
            preferred_element_type=jnp.float32,
        ) + b_out_ref[...]
        mean_out_ref[...] = mean.astype(mean_out_ref.dtype)

    return kernel


def mlp_policy_forward(obs, params, logstd, *, tile_b=None,
                       compute_dtype=jnp.bfloat16):
    """MLPPolicySL forward pass.

    Args:
      obs:    (B, ob_dim) f32
      params: list of (W, b); W: (in, out), b: (1, out); last entry is the
              output layer (no activation).
      logstd: (1, ac_dim) f32
    Returns:
      (mean, std): both (B, ac_dim) f32 — the Normal distribution parameters.
    """
    n_layers = len(params) - 1
    B, ob_dim = obs.shape
    ac_dim = params[-1][0].shape[1]

    # Lane-dense padded feature dims: [ob, size, ..., size, ac] -> mult of 128.
    dims = [ob_dim] + [w.shape[1] for w, _ in params]
    pdims = [_round_up(d, LANE) for d in dims]

    # Batch tile: multiple of 16 (bf16 sublane pack), capped for VMEM headroom
    # on v7x's smaller VMEM.  Batch is zero-padded to a multiple of the tile.
    if tile_b is None:
        tile_b = min(256, _round_up(B, 16))
    Bp = _round_up(B, tile_b)

    obs_p = _pad2(obs.astype(jnp.float32), Bp, pdims[0])

    flat_inputs = [obs_p]
    in_specs = [pl.BlockSpec((tile_b, pdims[0]), lambda i: (i, 0))]
    for li, (w, b) in enumerate(params):
        # Zero-fill padded rows/cols so padded lanes never leak into mean.
        w_p = _pad2(w.astype(jnp.float32), pdims[li], pdims[li + 1]).astype(compute_dtype)
        b_p = _pad2(b.astype(jnp.float32), 1, pdims[li + 1])
        flat_inputs += [w_p, b_p]
        in_specs += [
            pl.BlockSpec(w_p.shape, lambda i: (0, 0)),  # resident across grid
            pl.BlockSpec(b_p.shape, lambda i: (0, 0)),
        ]

    out_specs = pl.BlockSpec((tile_b, pdims[-1]), lambda i: (i, 0))
    out_shape = jax.ShapeDtypeStruct((Bp, pdims[-1]), jnp.float32)

    # Cost estimate so XLA schedules surrounding ops around the custom call.
    flops = 2 * Bp * sum(pdims[i] * pdims[i + 1] for i in range(len(pdims) - 1))
    transcendentals = Bp * sum(pdims[1:-1])  # tanh per hidden unit
    bytes_accessed = (
        sum(int(x.size) * x.dtype.itemsize for x in flat_inputs)
        + Bp * pdims[-1] * 4
    )

    # VMEM budget: 2x buffers per input (Pallas double-buffers), streamed
    # obs/mean tiles, plus a few f32 activation temporaries.  Give headroom.
    resident_bytes = sum(int(x.size) * x.dtype.itemsize for x in flat_inputs[1:])
    streamed_bytes = tile_b * (pdims[0] + pdims[-1]) * 4
    est = 2 * (resident_bytes + streamed_bytes) + 4 * tile_b * max(pdims) * 4
    vmem_limit = min(96 << 20, max(32 << 20, int(1.25 * est)))
    # TODO(synk): if `size` is ever >~2048, switch hidden-layer weights to a
    # pipelined K-tiled load instead of keeping all weights VMEM-resident.

    mean_p = pl.pallas_call(
        _make_mlp_policy_kernel(n_layers),
        grid=(Bp // tile_b,),
        in_specs=in_specs,
        out_specs=out_specs,
        out_shape=out_shape,
        compiler_params=pltpu.CompilerParams(
            dimension_semantics=("parallel",),
            vmem_limit_bytes=vmem_limit,
        ),
        cost_estimate=pl.CostEstimate(
            flops=flops,
            transcendentals=transcendentals,
            bytes_accessed=bytes_accessed,
        ),
    )(*flat_inputs)

    mean = mean_p[:B, :ac_dim]
    # std does not depend on obs: compute exp + broadcast outside the kernel.
    std = jnp.broadcast_to(jnp.exp(logstd), mean.shape)
    return mean, std


def init_params(key, ob_dim, ac_dim, n_layers, size):
    """Parameter init matching the shapes built by build_mlp (transposed W)."""
    params = []
    in_size = ob_dim
    dims = [size] * n_layers + [ac_dim]
    for out_size in dims:
        key, kw, kb = jax.random.split(key, 3)
        bound = 1.0 / jnp.sqrt(float(in_size))
        w = jax.random.uniform(
            kw, (in_size, out_size), jnp.float32, minval=-bound, maxval=bound
        )
        b = jax.random.uniform(
            kb, (1, out_size), jnp.float32, minval=-bound, maxval=bound
        )
        params.append((w, b))
        in_size = out_size
    logstd = jnp.zeros((1, ac_dim), jnp.float32)
    return params, logstd


def reference_forward_bf16(obs, params, logstd):
    """Plain-JAX reference with the same bf16-matmul / f32-accumulate recipe."""
    h = obs.astype(jnp.float32)
    for w, b in params[:-1]:
        y = jnp.dot(h.astype(jnp.bfloat16), w.astype(jnp.bfloat16),
                    preferred_element_type=jnp.float32)
        h = jnp.tanh(y + b)
    w, b = params[-1]
    mean = jnp.dot(h.astype(jnp.bfloat16), w.astype(jnp.bfloat16),
                   preferred_element_type=jnp.float32) + b
    std = jnp.broadcast_to(jnp.exp(logstd), mean.shape)
    return mean, std


def reference_forward_f32(obs, params, logstd):
    """Pure-f32 reference (exact PyTorch semantics) for a loose sanity check."""
    h = obs
    for w, b in params[:-1]:
        h = jnp.tanh(h @ w + b)
    w, b = params[-1]
    mean = h @ w + b
    std = jnp.broadcast_to(jnp.exp(logstd), mean.shape)
    return mean, std


if __name__ == "__main__":
    batch = 8
    ob_dim = 16
    ac_dim = 8
    n_layers = 2
    size = 32

    key = jax.random.PRNGKey(0)
    key, k_obs, k_params = jax.random.split(key, 3)

    obs = jax.random.normal(k_obs, (batch, ob_dim), jnp.float32)
    params, logstd = init_params(k_params, ob_dim, ac_dim, n_layers, size)

    mean, std = mlp_policy_forward(obs, params, logstd)
    jax.block_until_ready((mean, std))

    mean_bf, std_ref = reference_forward_bf16(obs, params, logstd)
    mean_f32, _ = reference_forward_f32(obs, params, logstd)

    assert mean.shape == (batch, ac_dim) and std.shape == (batch, ac_dim)
    # Exact-recipe reference (bf16 matmuls, f32 accumulate): tight tolerance.
    assert jnp.allclose(mean, mean_bf, atol=1e-4, rtol=1e-4)
    # Pure-f32 PyTorch-semantics reference: loose tolerance for bf16 rounding.
    assert jnp.allclose(mean, mean_f32, atol=5e-2, rtol=5e-2)
    assert jnp.allclose(std, std_ref, atol=1e-6, rtol=1e-6)

    print("KERNEL_OK")
</pallas_src>

<mosaic_0001>
module attributes {stable_mosaic.version = 11 : i64} {
  func.func @kernel(%arg0: i32, %arg1: memref<16x128xf32, #tpu.memory_space<vmem>>, %arg2: memref<128x128xbf16, #tpu.memory_space<vmem>>, %arg3: memref<1x128xf32, #tpu.memory_space<vmem>>, %arg4: memref<128x128xbf16, #tpu.memory_space<vmem>>, %arg5: memref<1x128xf32, #tpu.memory_space<vmem>>, %arg6: memref<128x128xbf16, #tpu.memory_space<vmem>>, %arg7: memref<1x128xf32, #tpu.memory_space<vmem>>, %arg8: memref<16x128xf32, #tpu.memory_space<vmem>>) attributes {dimension_semantics = [#tpu.dimension_semantics<parallel>], iteration_bounds = array<i64: 1>, scalar_prefetch = 0 : i64, scratch_operands = 0 : i64, tpu.core_type = #tpu.core_type<tc>, window_params = [{transform_indices = @transform_0, window_bounds = array<i64: 16, 128>}, {pipeline_mode = #tpu.pipeline_mode<synchronous>, transform_indices = @transform_1, window_bounds = array<i64: 128, 128>}, {pipeline_mode = #tpu.pipeline_mode<synchronous>, transform_indices = @transform_2, window_bounds = array<i64: 1, 128>}, {pipeline_mode = #tpu.pipeline_mode<synchronous>, transform_indices = @transform_3, window_bounds = array<i64: 128, 128>}, {pipeline_mode = #tpu.pipeline_mode<synchronous>, transform_indices = @transform_4, window_bounds = array<i64: 1, 128>}, {pipeline_mode = #tpu.pipeline_mode<synchronous>, transform_indices = @transform_5, window_bounds = array<i64: 128, 128>}, {pipeline_mode = #tpu.pipeline_mode<synchronous>, transform_indices = @transform_6, window_bounds = array<i64: 1, 128>}, {transform_indices = @transform_7, window_bounds = array<i64: 16, 128>}]} {
    %c0 = arith.constant 0 : index
    %c0_0 = arith.constant 0 : index
    %0 = vector.load %arg1[%c0, %c0_0] : memref<16x128xf32, #tpu.memory_space<vmem>>, vector<16x128xf32>
    %1 = arith.truncf %0 : vector<16x128xf32> to vector<16x128xbf16>
    %c0_1 = arith.constant 0 : index
    %c0_2 = arith.constant 0 : index
    %2 = vector.load %arg2[%c0_1, %c0_2] : memref<128x128xbf16, #tpu.memory_space<vmem>>, vector<128x128xbf16>
    %cst = arith.constant dense<0.000000e+00> : vector<16x128xf32>
    %3 = tpu.matmul %1, %2, %cst {dimension_numbers = #tpu.dot_dimension_numbers<[1], [0], [0], [1], [0, 0, 1, 1], [], []>} : vector<16x128xbf16>, vector<128x128xbf16>, vector<16x128xf32> -> vector<16x128xf32>
    %c0_3 = arith.constant 0 : index
    %c0_4 = arith.constant 0 : index
    %4 = vector.load %arg3[%c0_3, %c0_4] : memref<1x128xf32, #tpu.memory_space<vmem>>, vector<1x128xf32>
    %5 = vector.broadcast %4 : vector<1x128xf32> to vector<16x128xf32>
    %6 = arith.addf %3, %5 : vector<16x128xf32>
    %7 = math.tanh %6 : vector<16x128xf32>
    %8 = arith.truncf %7 : vector<16x128xf32> to vector<16x128xbf16>
    %c0_5 = arith.constant 0 : index
    %c0_6 = arith.constant 0 : index
    %9 = vector.load %arg4[%c0_5, %c0_6] : memref<128x128xbf16, #tpu.memory_space<vmem>>, vector<128x128xbf16>
    %cst_7 = arith.constant dense<0.000000e+00> : vector<16x128xf32>
    %10 = tpu.matmul %8, %9, %cst_7 {dimension_numbers = #tpu.dot_dimension_numbers<[1], [0], [0], [1], [0, 0, 1, 1], [], []>} : vector<16x128xbf16>, vector<128x128xbf16>, vector<16x128xf32> -> vector<16x128xf32>
    %c0_8 = arith.constant 0 : index
    %c0_9 = arith.constant 0 : index
    %11 = vector.load %arg5[%c0_8, %c0_9] : memref<1x128xf32, #tpu.memory_space<vmem>>, vector<1x128xf32>
    %12 = vector.broadcast %11 : vector<1x128xf32> to vector<16x128xf32>
    %13 = arith.addf %10, %12 : vector<16x128xf32>
    %14 = math.tanh %13 : vector<16x128xf32>
    %15 = arith.truncf %14 : vector<16x128xf32> to vector<16x128xbf16>
    %c0_10 = arith.constant 0 : index
    %c0_11 = arith.constant 0 : index
    %16 = vector.load %arg6[%c0_10, %c0_11] : memref<128x128xbf16, #tpu.memory_space<vmem>>, vector<128x128xbf16>
    %cst_12 = arith.constant dense<0.000000e+00> : vector<16x128xf32>
    %17 = tpu.matmul %15, %16, %cst_12 {dimension_numbers = #tpu.dot_dimension_numbers<[1], [0], [0], [1], [0, 0, 1, 1], [], []>} : vector<16x128xbf16>, vector<128x128xbf16>, vector<16x128xf32> -> vector<16x128xf32>
    %c0_13 = arith.constant 0 : index
    %c0_14 = arith.constant 0 : index
    %18 = vector.load %arg7[%c0_13, %c0_14] : memref<1x128xf32, #tpu.memory_space<vmem>>, vector<1x128xf32>
    %19 = vector.broadcast %18 : vector<1x128xf32> to vector<16x128xf32>
    %20 = arith.addf %17, %19 : vector<16x128xf32>
    %c0_15 = arith.constant 0 : index
    %c0_16 = arith.constant 0 : index
    %21 = vector.load %arg8[%c0_15, %c0_16] : memref<16x128xf32, #tpu.memory_space<vmem>>, vector<16x128xf32>
    tpu.vector_store %arg8[%c0_15, %c0_16], %20 {strides = array<i32>} : memref<16x128xf32, #tpu.memory_space<vmem>>, vector<16x128xf32>,
    return
  }
  func.func @transform_0(%arg0: i32) -> (i32, i32) {
    %c0_i32 = arith.constant 0 : i32
    %c0_i32_0 = arith.constant 0 : i32
    return %arg0, %c0_i32 : i32, i32
  }
  func.func @transform_1(%arg0: i32) -> (i32, i32) {
    %c0_i32 = arith.constant 0 : i32
    %c0_i32_0 = arith.constant 0 : i32
    %c0_i32_1 = arith.constant 0 : i32
    return %c0_i32, %c0_i32_0 : i32, i32
  }
  func.func @transform_2(%arg0: i32) -> (i32, i32) {
    %c0_i32 = arith.constant 0 : i32
    %c0_i32_0 = arith.constant 0 : i32
    %c0_i32_1 = arith.constant 0 : i32
    return %c0_i32, %c0_i32_0 : i32, i32
  }
  func.func @transform_3(%arg0: i32) -> (i32, i32) {
    %c0_i32 = arith.constant 0 : i32
    %c0_i32_0 = arith.constant 0 : i32
    %c0_i32_1 = arith.constant 0 : i32
    return %c0_i32, %c0_i32_0 : i32, i32
  }
  func.func @transform_4(%arg0: i32) -> (i32, i32) {
    %c0_i32 = arith.constant 0 : i32
    %c0_i32_0 = arith.constant 0 : i32
    %c0_i32_1 = arith.constant 0 : i32
    return %c0_i32, %c0_i32_0 : i32, i32
  }
  func.func @transform_5(%arg0: i32) -> (i32, i32) {
    %c0_i32 = arith.constant 0 : i32
    %c0_i32_0 = arith.constant 0 : i32
    %c0_i32_1 = arith.constant 0 : i32
    return %c0_i32, %c0_i32_0 : i32, i32
  }
  func.func @transform_6(%arg0: i32) -> (i32, i32) {
    %c0_i32 = arith.constant 0 : i32
    %c0_i32_0 = arith.constant 0 : i32
    %c0_i32_1 = arith.constant 0 : i32
    return %c0_i32, %c0_i32_0 : i32, i32
  }
  func.func @transform_7(%arg0: i32) -> (i32, i32) {
    %c0_i32 = arith.constant 0 : i32
    %c0_i32_0 = arith.constant 0 : i32
    return %arg0, %c0_i32 : i32, i32
  }
}

</mosaic_0001>

<bundles_post_ra>
// kernel: tpu_custom_call.1
= control target key start
LH: loop header
LB: loop body
LE: loop exit
PB: predicated region body
PF: predicated region fallthrough
CT: control target
= control target key end

     0   :  { %12 = vsyncpa [#allocation3], 0  ;;  %s896_s0 = inlined_call_operand.hbm [shape: f32[16,128], index: 0, kind: input, shape index: {}]   ;;  %s897_s1 = inlined_call_operand.hbm [shape: bf16[128,128], index: 1, kind: input, shape index: {}]   ;;  %s898_s2 = inlined_call_operand.vmem [shape: f32[1,128], index: 2, kind: input, shape index: {}]   ;;  %s899_s3 = inlined_call_operand.hbm [shape: bf16[128,128], index: 3, kind: input, shape index: {}]   ;;  %s900_s4 = inlined_call_operand.vmem [shape: f32[1,128], index: 4, kind: input, shape index: {}]   ;;  %s901_s5 = inlined_call_operand.hbm [shape: bf16[128,128], index: 5, kind: input, shape index: {}]   ;;  %s902_s6 = inlined_call_operand.vmem [shape: f32[1,128], index: 6, kind: input, shape index: {}]   ;;  %s903_s7 = inlined_call_operand.hbm [shape: f32[16,128], index: 7, kind: output, shape index: {}]  }
   0x1   :  { %13 = vsyncpa [#allocation6], 0 }
   0x2   :  { %14 = vsyncpa [#allocation9], 0 }
   0x3   :  { %15 = vsyncpa [#allocation4], 0  ;;  %s724_s24 = smov [#allocation5]   ;;  %s606_s28 = scalar_lea.hbm %s897_s1, 1024 }
   0x4   :  { %s33_s25 = sshll.u32 %s724_s24, 4  ;;  %p607_p0 = scmp.ne.s32.totalorder %s897_s1, %s606_s28  ;;  %s34_s25 = int_to_ptr.vmem [resolvable:$true] %s33_s25 }
   0x5   :  { %p610_p1 = scmp.lt.u32.totalorder %s606_s28, %s897_s1 }
   0x7   :  { %p612_p2 = pnand %p610_p1, %p607_p0 }
   0x9   :  { %615 = shalt.err (!%p612_p2)
}
   0xa   :  { %s616_s10 = scalar_lea.vmem %s34_s25, 1024  ;;  %p621_p4 = scmp.lt.s32.totalorder %s34_s25, %s34_s25 }
   0xb   :  { %p617_p3 = scmp.ne.s32.totalorder %s34_s25, %s616_s10  ;;  %p622_p5 = scmp.lt.s32.totalorder %s616_s10, %s616_s10 }
   0xd   :  { %p623_p6 = por %p622_p5, %p621_p4 }
   0xf   :  { %p624_p7 = pnand %p623_p6, %p617_p3 }
  0x11   :  { %627 = shalt.err (!%p624_p7)
}
  0x12   :  { %s725_s11 = smov 64   ;;  %s726_s12 = smov 4  }
  0x13   :  { %39 = dma.hbm_to_vmem [thread:$0]  %s897_s1, 1024, %s34_s25, [#allocation6], %s725_s11, %s725_s11, %s726_s12  }
  0x14   :  { %s727_s15 = smov [#allocation2]   ;;  %s628_s19 = scalar_lea.hbm %s896_s0, 256 }
  0x15   :  { %s21_s16 = sshll.u32 %s727_s15, 4  ;;  %p629_p8 = scmp.ne.s32.totalorder %s896_s0, %s628_s19  ;;  %s22_s16 = int_to_ptr.vmem [resolvable:$true] %s21_s16 }
  0x16   :  { %p632_p9 = scmp.lt.u32.totalorder %s628_s19, %s896_s0 }
  0x18   :  { %p634_p10 = pnand %p632_p9, %p629_p8 }
  0x1a   :  { %637 = shalt.err (!%p634_p10)
}
  0x1b   :  { %s638_s24 = scalar_lea.vmem %s22_s16, 256  ;;  %p643_p12 = scmp.lt.s32.totalorder %s22_s16, %s22_s16 }
  0x1c   :  { %p639_p11 = scmp.ne.s32.totalorder %s22_s16, %s638_s24  ;;  %p644_p13 = scmp.lt.s32.totalorder %s638_s24, %s638_s24 }
  0x1e   :  { %p645_p0 = por %p644_p13, %p643_p12 }
  0x20   :  { %p646_p1 = pnand %p645_p0, %p639_p11 }
  0x22   :  { %649 = shalt.err (!%p646_p1)
}
  0x23   :  { %s728_s1 = smov 128   ;;  %s729_s25 = smov 8  }
  0x24   :  { %27 = dma.hbm_to_vmem [thread:$0]  %s896_s0, 256, %s22_s16, [#allocation3], %s728_s1, %s728_s1, %s729_s25  }
  0x25   :  { %s730_s28 = smov [#allocation7]   ;;  %s731_s30 = smov [#allocation8]  }
  0x26   :  { %s47_s29 = sshll.u32 %s730_s28, 4  ;;  %s61_s8 = sshll.u32 %s731_s30, 4  ;;  %s48_s29 = int_to_ptr.vmem [resolvable:$true] %s47_s29  ;;  %s805_s8 = int_to_ptr.vmem [resolvable:$true] %s61_s8 }
  0x27   :  { %s650_s13 = scalar_lea.hbm %s899_s3, 1024 }
  0x28   :  { %p651_p2 = scmp.ne.s32.totalorder %s899_s3, %s650_s13  ;;  %p654_p3 = scmp.lt.u32.totalorder %s650_s13, %s899_s3 }
  0x2a   :  { %p656_p4 = pnand %p654_p3, %p651_p2 }
  0x2c   :  { %659 = shalt.err (!%p656_p4)
}
  0x2d   :  { %s660_s0 = scalar_lea.vmem %s48_s29, 1024  ;;  %p665_p6 = scmp.lt.s32.totalorder %s48_s29, %s48_s29 }
  0x2e   :  { %p661_p5 = scmp.ne.s32.totalorder %s48_s29, %s660_s0  ;;  %p666_p7 = scmp.lt.s32.totalorder %s660_s0, %s660_s0 }
  0x30   :  { %p667_p8 = por %p666_p7, %p665_p6 }
  0x32   :  { %p668_p9 = pnand %p667_p8, %p661_p5 }
  0x34   :  { %671 = shalt.err (!%p668_p9)
}
  0x35   :  { %53 = dma.hbm_to_vmem [thread:$0]  %s899_s3, 1024, %s48_s29, [#allocation6], %s725_s11, %s725_s11, %s726_s12  }
  0x36   :  { %s672_s22 = scalar_lea.hbm %s901_s5, 1024 }
  0x37   :  { %p673_p10 = scmp.ne.s32.totalorder %s901_s5, %s672_s22  ;;  %p676_p11 = scmp.lt.u32.totalorder %s672_s22, %s901_s5 }
  0x39   :  { %p678_p12 = pnand %p676_p11, %p673_p10 }
  0x3b   :  { %681 = shalt.err (!%p678_p12)
}
  0x3c   :  { %s682_s28 = scalar_lea.vmem %s805_s8, 1024  ;;  %p687_p0 = scmp.lt.s32.totalorder %s805_s8, %s805_s8 }
  0x3d   :  { %p683_p13 = scmp.ne.s32.totalorder %s805_s8, %s682_s28  ;;  %p688_p1 = scmp.lt.s32.totalorder %s682_s28, %s682_s28 }
  0x3f   :  { %p689_p2 = por %p688_p1, %p687_p0 }
  0x41   :  { %p690_p3 = pnand %p689_p2, %p683_p13 }
  0x43   :  { %693 = shalt.err (!%p690_p3)
}
  0x44   :  { %67 = dma.hbm_to_vmem [thread:$0]  %s901_s5, 1024, %s805_s8, [#allocation9], %s725_s11, %s725_s11, %s726_s12  }
  0x45   :  { %716 = dma.done.wait [#allocation3], 256  }
  0x46   :  { %717 = vsyncadd [#allocation3], 4294967040 }
  0x47   :  { %718 = dma.done.wait [#allocation6], 2048  }
  0x48   :  { %719 = vsyncadd [#allocation6], 4294965248 }
  0x49   :  { %720 = dma.done.wait [#allocation9], 1024  }
  0x4a   :  { %721 = vsyncadd [#allocation9], 4294966272  ;;  %v732_v0 = vmov 0.0   ;;  %vm733_vm0 = vmmov 0   ;;  %v574_v1 = vld [vmem:[#allocation5] sm:$0xff]   ;;  %v575_v2 = vld [vmem:[#allocation5 + $0x8] sm:$0xff]  }
  0x4b   :  { %503 = vmatprep.subr.bf16.mxu0 %v732_v0  ;;  %519 = vmatprep.mubr.msk.bf16.mxu0 %vm733_vm0, %v732_v0  ;;  %v576_v3 = vld [vmem:[#allocation5 + $0x10] sm:$0xff]   ;;  %v582_v4 = vld [vmem:[#allocation7] sm:$0xff]   ;;  %v577_v5 = vld [vmem:[#allocation5 + $0x18] sm:$0xff]   ;;  %s734_s9 = smov [#allocation10]  }
  0x4c   :  { %523 = vmatprep.subr.bf16.mxu1 %v732_v0  ;;  %539 = vmatprep.mubr.msk.bf16.mxu1 %vm733_vm0, %v732_v0  ;;  %v583_v6 = vld [vmem:[#allocation7 + $0x8] sm:$0xff]   ;;  %v578_v7 = vld [vmem:[#allocation5 + $0x20] sm:$0xff]   ;;  %v584_v8 = vld [vmem:[#allocation7 + $0x10] sm:$0xff]   ;;  %s435_s10 = sshll.u32 %s734_s9, 4  ;;  %s436_s10 = int_to_ptr.vmem [resolvable:$true] %s435_s10 }
  0x4d   :  { %504 = vmatpush3.bf16.msra.mxu0 %v574_v1  ;;  %524 = vmatpush3.bf16.msra.mxu1 %v582_v4  ;;  %v579_v9 = vld [vmem:[#allocation5 + $0x28] sm:$0xff]   ;;  %v585_v10 = vld [vmem:[#allocation7 + $0x18] sm:$0xff]   ;;  %v580_v11 = vld [vmem:[#allocation5 + $0x30] sm:$0xff]   ;;  %p699_p5 = scmp.lt.s32.totalorder %s436_s10, %s436_s10 }
  0x4e   :  { %505 = vmatprep.subr.bf16.mxu0 %v732_v0  ;;  %525 = vmatprep.subr.bf16.mxu1 %v732_v0  ;;  %v581_v12 = vld [vmem:[#allocation5 + $0x38] sm:$0xff]   ;;  %v83_v13 = vld [vmem:[#allocation2] sm:$0xff]  ;;  %v586_v16 = vld [vmem:[#allocation7 + $0x20] sm:$0xff]  }
  0x4f   :  { %v84_v14 = vld [vmem:[#allocation2 + $0x8] sm:$0xff]  ;;  %v587_v17 = vld [vmem:[#allocation7 + $0x28] sm:$0xff]   ;;  %v588_v18 = vld [vmem:[#allocation7 + $0x30] sm:$0xff]  }
  0x50   :  { %v85_v15 = vpack.c.bf16 %v84_v14, %v83_v13  ;;  %v589_v19 = vld [vmem:[#allocation7 + $0x38] sm:$0xff]   ;;  %v590_v20 = vld [vmem:[#allocation8] sm:$0xff]   ;;  %v591_v21 = vld [vmem:[#allocation8 + $0x8] sm:$0xff]  }
  0x51   :  { %506 = vmatpush3.bf16.msra.mxu0 %v575_v2  ;;  %526 = vmatpush3.bf16.msra.mxu1 %v583_v6  ;;  %v592_v22 = vld [vmem:[#allocation8 + $0x10] sm:$0xff]   ;;  %v593_v23 = vld [vmem:[#allocation8 + $0x18] sm:$0xff]   ;;  %v594_v34 = vld [vmem:[#allocation8 + $0x20] sm:$0xff]  }
  0x52   :  { %507 = vmatprep.subr.bf16.mxu0 %v732_v0  ;;  %527 = vmatprep.subr.bf16.mxu1 %v732_v0  ;;  %v449_v24 = vld [vmem:[%s898_s2] ss:$0 sm:$0xff]  ;;  %v595_v35 = vld [vmem:[#allocation8 + $0x28] sm:$0xff]   ;;  %v597_v37 = vld [vmem:[#allocation8 + $0x38] sm:$0xff]  }
  0x53   :  { %v596_v36 = vld [vmem:[#allocation8 + $0x30] sm:$0xff]  }
  0x54   :  { %v458_v38 = vld [vmem:[%s900_s4] ss:$0 sm:$0xff]  ;;  %s694_s4 = scalar_lea.vmem %s436_s10, 256 }
  0x55   :  { %508 = vmatpush3.bf16.msra.mxu0 %v576_v3  ;;  %528 = vmatpush3.bf16.msra.mxu1 %v584_v8  ;;  %v467_v48 = vld [vmem:[%s902_s6] ss:$0 sm:$0xff]  ;;  %p695_p4 = scmp.ne.s32.totalorder %s436_s10, %s694_s4  ;;  %p700_p6 = scmp.lt.s32.totalorder %s694_s4, %s694_s4 }
  0x56   :  { %509 = vmatprep.subr.bf16.mxu0 %v732_v0  ;;  %529 = vmatprep.subr.bf16.mxu1 %v732_v0 }
  0x57   :  { %p701_p7 = por %p700_p6, %p699_p5 }
  0x59   :  { %510 = vmatpush3.bf16.msra.mxu0 %v577_v5  ;;  %530 = vmatpush3.bf16.msra.mxu1 %v585_v10  ;;  %p702_p8 = pnand %p701_p7, %p695_p4 }
  0x5a   :  { %511 = vmatprep.subr.bf16.mxu0 %v732_v0  ;;  %531 = vmatprep.subr.bf16.mxu1 %v732_v0 }
  0x5d   :  { %512 = vmatpush3.bf16.msra.mxu0 %v578_v7  ;;  %532 = vmatpush3.bf16.msra.mxu1 %v586_v16 }
  0x5e   :  { %513 = vmatprep.subr.bf16.mxu0 %v732_v0  ;;  %533 = vmatprep.subr.bf16.mxu1 %v732_v0 }
  0x61   :  { %514 = vmatpush3.bf16.msra.mxu0 %v579_v9  ;;  %534 = vmatpush3.bf16.msra.mxu1 %v587_v17 }
  0x62   :  { %515 = vmatprep.subr.bf16.mxu0 %v732_v0  ;;  %535 = vmatprep.subr.bf16.mxu1 %v732_v0 }
  0x65   :  { %516 = vmatpush3.bf16.msra.mxu0 %v580_v11  ;;  %536 = vmatpush3.bf16.msra.mxu1 %v588_v18 }
  0x66   :  { %517 = vmatprep.subr.bf16.mxu0 %v732_v0  ;;  %537 = vmatprep.subr.bf16.mxu1 %v732_v0 }
  0x69   :  { %518 = vmatpush3.bf16.msra.mxu0 %v581_v12  ;;  %538 = vmatpush3.bf16.msra.mxu1 %v589_v19 }
  0x6a   :  { %543 = vmatprep.subr.bf16.mxu0 %v732_v0 }
  0x6c   :  { %520 = vmatmul.mubr.bf16.vlgmr.msra.gmra.mrb[0].mxu0 %v85_v15 }
  0x6d   :  { %559 = vmatprep.mubr.msk.bf16.mxu0 %vm733_vm0, %v732_v0  ;;  %544 = vmatpush3.bf16.msra.mxu0 %v590_v20 }
  0x6e   :  { %545 = vmatprep.subr.bf16.mxu0 %v732_v0 }
  0x71   :  { %546 = vmatpush3.bf16.msra.mxu0 %v591_v21 }
  0x72   :  { %547 = vmatprep.subr.bf16.mxu0 %v732_v0 }
  0x75   :  { %548 = vmatpush3.bf16.msra.mxu0 %v592_v22 }
  0x76   :  { %549 = vmatprep.subr.bf16.mxu0 %v732_v0 }
  0x79   :  { %550 = vmatpush3.bf16.msra.mxu0 %v593_v23 }
  0x7a   :  { %551 = vmatprep.subr.bf16.mxu0 %v732_v0 }
  0x7d   :  { %552 = vmatpush3.bf16.msra.mxu0 %v594_v34 }
  0x7e   :  { %553 = vmatprep.subr.bf16.mxu0 %v732_v0 }
  0x81   :  { %554 = vmatpush3.bf16.msra.mxu0 %v595_v35 }
  0x82   :  { %555 = vmatprep.subr.bf16.mxu0 %v732_v0 }
  0x85   :  { %556 = vmatpush3.bf16.msra.mxu0 %v596_v36 }
  0x86   :  { %557 = vmatprep.subr.bf16.mxu0 %v732_v0 }
  0x89   :  { %558 = vmatpush3.bf16.msra.mxu0 %v597_v37 }
 0x13f   :  { %v191_v25 = vpop.f32.mrb[0].mxu0 }
 0x140   :  { %v192_v26 = vadd.f32 %v449_v24, %v191_v25  ;;  %v521_v27 = vpop.f32.mrb[1].mxu0 }
 0x141   :  { %v194_v28 = vpop.f32.mrb[2].mxu0 }
 0x142   :  { %v195_v29 = vadd.f32 %v449_v24, %v194_v28  ;;  %v522_v30 = vpop.f32.mrb[3].mxu0  ;;  %598 = vtanh.f32 %v192_v26 }
 0x144   :  { %600 = vtanh.f32 %v195_v29 }
 0x14c   :  { %v599_v31 = vpop.eup %598 }
 0x14e   :  { %v601_v32 = vpop.eup %600 }
 0x14f   :  { %v200_v33 = vpack.c.bf16 %v601_v32, %v599_v31 }
 0x151   :  { %540 = vmatmul.mubr.bf16.vlgmr.msra.gmra.mrb[0].mxu1 %v200_v33 }
 0x224   :  { %v306_v39 = vpop.f32.mrb[0].mxu1 }
 0x225   :  { %v307_v40 = vadd.f32 %v458_v38, %v306_v39  ;;  %v541_v41 = vpop.f32.mrb[1].mxu1 }
 0x226   :  { %v309_v42 = vpop.f32.mrb[2].mxu1 }
 0x227   :  { %v310_v43 = vadd.f32 %v458_v38, %v309_v42  ;;  %v542_v44 = vpop.f32.mrb[3].mxu1  ;;  %602 = vtanh.f32 %v307_v40 }
 0x229   :  { %604 = vtanh.f32 %v310_v43 }
 0x231   :  { %v603_v45 = vpop.eup %602 }
 0x233   :  { %v605_v46 = vpop.eup %604 }
 0x234   :  { %v315_v47 = vpack.c.bf16 %v605_v46, %v603_v45 }
 0x236   :  { %560 = vmatmul.mubr.bf16.vlgmr.msra.gmra.mrb[4].mxu0 %v315_v47 }
 0x309   :  { %v421_v49 = vpop.f32.mrb[4].mxu0 }
 0x30a   :  { %v422_v50 = vadd.f32 %v467_v48, %v421_v49  ;;  %v561_v51 = vpop.f32.mrb[5].mxu0 }
 0x30b   :  { %v424_v52 = vpop.f32.mrb[6].mxu0 }
 0x30c   :  { %428 = vst [vmem:[#allocation10] sm:$0xff] %v422_v50  ;;  %v425_v53 = vadd.f32 %v467_v48, %v424_v52  ;;  %v562_v54 = vpop.f32.mrb[7].mxu0 }
 0x30e   :  { %429 = vst [vmem:[#allocation10 + $0x8] sm:$0xff] %v425_v53 }
 0x30f   :  { %705 = shalt.err (!%p702_p8)
}
 0x310   :  { %s706_s14 = scalar_lea.hbm %s903_s7, 256 }
 0x311   :  { %p707_p9 = scmp.ne.s32.totalorder %s903_s7, %s706_s14  ;;  %p710_p10 = scmp.lt.u32.totalorder %s706_s14, %s903_s7 }
 0x313   :  { %p712_p11 = pnand %p710_p10, %p707_p9 }
 0x315   :  { %715 = shalt.err (!%p712_p11)
}
 0x316   :  { %441 = dma.vmem_to_hbm [thread:$0]  %s436_s10, 256, %s903_s7, [#allocation4], %s728_s1, %s728_s1, %s729_s25  }
 0x317   :  { %722 = dma.done.wait [#allocation4], 256  }
 0x318   :  { %723 = vsyncadd [#allocation4], 4294967040 }
 0x319   :  { %445 = vsyncpa [#allocation3], 1 }
 0x31a   :  { %446 = vsyncpa [#allocation6], 1 }
 0x31b   :  { %447 = vsyncpa [#allocation9], 1 }
 0x31c   :  { %448 = vsyncpa [#allocation4], 1 }

</bundles_post_ra>
